<compile_context>
chip_gen: v6e
topology: v6e:2x2x1
jax: 0.10.0
libtpu: 0.0.40
codegen_flags: <defaults>
</compile_context>

<pallas_src>
import functools

import jax
import jax.numpy as jnp
from jax import lax
from jax.experimental import pallas as pl
from jax.experimental.pallas import tpu as pltpu


def _ohkm_mse_kernel(pred_ref, gt_ref, w_ref, out_ref, *,
                     topk, num_joints, heatmap_size, use_target_weight):
    # pred_ref/gt_ref: (TB, J, D) native dtype; w_ref: (TB, J, 1); out_ref: (1, TB, 1) f32
    pred = pred_ref[...].astype(jnp.float32)
    gt = gt_ref[...].astype(jnp.float32)

    d = pred - gt
    s = jnp.sum(d * d, axis=-1)                       # (TB, J): sum over heatmap dim

    if use_target_weight:
        w = w_ref[...].astype(jnp.float32)[..., 0]    # (TB, J)
        s = s * (w * w)                               # ((p-g)*w)^2 == (p-g)^2 * w^2

    per_joint = s * (0.5 / heatmap_size)              # 0.5 * mean over D, per joint

    tb = per_joint.shape[0]
    # torch.topk (value sum) replicated by k unrolled (row-wise max, mask first
    # occurrence) steps, vectorized over the TB rows.
    iota = lax.broadcasted_iota(jnp.int32, (tb, num_joints), 1)
    vals = per_joint
    acc = jnp.zeros((tb, 1), jnp.float32)
    for _ in range(topk):
        m = jnp.max(vals, axis=-1, keepdims=True)             # (TB, 1)
        acc = acc + m
        masked_iota = jnp.where(vals == m, iota, num_joints)
        first = jnp.min(masked_iota, axis=-1, keepdims=True)  # first occurrence of max
        vals = jnp.where(iota == first, -jnp.inf, vals)

    out_ref[0] = acc * (1.0 / topk)                   # per-batch OHKM values (TB, 1)


def _choose_batch_tile(batch_size, bytes_per_batch_elem,
                       target_block_bytes=2 * 1024 * 1024):
    """Largest divisor of batch_size whose per-input block stays near ~2 MiB.

    Keeps 2 inputs x 2 pipeline buffers comfortably inside the default scoped
    VMEM limit on every generation (incl. v5e's 16 MiB, v7x's 64 MiB physical).
    """
    max_tb = max(1, target_block_bytes // max(1, bytes_per_batch_elem))
    tb = 1
    for cand in range(1, batch_size + 1):
        if batch_size % cand == 0 and cand <= max_tb:
            tb = cand
    return tb


def joints_ohkm_mse_loss(output, target, target_weight,
                         use_target_weight=True, topk=8):
    """output/target: (B, J, D); target_weight: (B, J, 1). Returns scalar f32 loss."""
    B, J, D = output.shape
    if topk > J:
        raise ValueError(f"topk={topk} > num_joints={J} (torch.topk would raise)")

    itemsize = max(jnp.dtype(output.dtype).itemsize, jnp.dtype(target.dtype).itemsize)
    TB = _choose_batch_tile(B, J * D * itemsize)
    num_tiles = B // TB

    kernel = functools.partial(
        _ohkm_mse_kernel,
        topk=topk,
        num_joints=J,
        heatmap_size=D,
        use_target_weight=use_target_weight,
    )

    w_itemsize = jnp.dtype(target_weight.dtype).itemsize
    cost = pl.CostEstimate(
        flops=3 * B * J * D,
        transcendentals=0,
        bytes_accessed=(B * J * D * (jnp.dtype(output.dtype).itemsize
                                     + jnp.dtype(target.dtype).itemsize)
                        + B * J * w_itemsize + B * 4),
    )

    per_batch = pl.pallas_call(
        kernel,
        out_shape=jax.ShapeDtypeStruct((num_tiles, TB, 1), jnp.float32),
        grid_spec=pltpu.PrefetchScalarGridSpec(
            num_scalar_prefetch=0,
            grid=(num_tiles,),
            in_specs=[
                pl.BlockSpec((TB, J, D), lambda t: (t, 0, 0)),
                pl.BlockSpec((TB, J, D), lambda t: (t, 0, 0)),
                pl.BlockSpec((TB, J, 1), lambda t: (t, 0, 0)),
            ],
            out_specs=pl.BlockSpec((1, TB, 1), lambda t: (t, 0, 0)),
        ),
        compiler_params=pltpu.CompilerParams(
            dimension_semantics=("parallel",),      # independent tiles -> megacore OK
            vmem_limit_bytes=32 * 1024 * 1024,
        ),
        cost_estimate=cost,
    )(output, target, target_weight)                # native dtypes; cast in-kernel

    # Final mean over B scalars is trivial in XLA.
    return jnp.mean(per_batch.reshape(B))


def _reference_loss(output, target, target_weight, use_target_weight, topk):
    pred = output.astype(jnp.float32)
    gt = target.astype(jnp.float32)
    if use_target_weight:
        w = target_weight.astype(jnp.float32)
        pred = pred * w
        gt = gt * w
    per_joint = 0.5 * jnp.mean((pred - gt) ** 2, axis=2)      # (B, J)
    topv, _ = lax.top_k(per_joint, topk)                       # (B, topk)
    return jnp.mean(jnp.sum(topv, axis=1) / topk)


if __name__ == "__main__":
    key = jax.random.PRNGKey(0)
    k1, k2, k3 = jax.random.split(key, 3)

    B, J, H, W = 4, 16, 16, 16
    D = H * W
    topk = 8

    output = jax.random.normal(k1, (B, J, D), dtype=jnp.float32)
    target = jax.random.normal(k2, (B, J, D), dtype=jnp.float32)
    target_weight = jax.random.uniform(k3, (B, J, 1), dtype=jnp.float32)

    # With target weight.
    loss = joints_ohkm_mse_loss(output, target, target_weight,
                                use_target_weight=True, topk=topk)
    loss = jax.block_until_ready(loss)
    ref = _reference_loss(output, target, target_weight, True, topk)
    assert jnp.allclose(loss, ref, rtol=1e-5, atol=1e-6), (loss, ref)

    # Without target weight.
    loss_nw = joints_ohkm_mse_loss(output, target, target_weight,
                                   use_target_weight=False, topk=topk)
    loss_nw = jax.block_until_ready(loss_nw)
    ref_nw = _reference_loss(output, target, target_weight, False, topk)
    assert jnp.allclose(loss_nw, ref_nw, rtol=1e-5, atol=1e-6), (loss_nw, ref_nw)

    print("KERNEL_OK")
</pallas_src>

<mosaic_0001>
module attributes {stable_mosaic.version = 11 : i64} {
  func.func @_ohkm_mse_kernel(%arg0: i32, %arg1: memref<4x16x256xf32, #tpu.memory_space<vmem>>, %arg2: memref<4x16x256xf32, #tpu.memory_space<vmem>>, %arg3: memref<4x16x1xf32, #tpu.memory_space<vmem>>, %arg4: memref<1x4x1xf32, #tpu.memory_space<vmem>>) attributes {dimension_semantics = [#tpu.dimension_semantics<parallel>], iteration_bounds = array<i64: 1>, scalar_prefetch = 0 : i64, scratch_operands = 0 : i64, tpu.core_type = #tpu.core_type<tc>, window_params = [{transform_indices = @transform_0, window_bounds = array<i64: 4, 16, 256>}, {transform_indices = @transform_1, window_bounds = array<i64: 4, 16, 256>}, {transform_indices = @transform_2, window_bounds = array<i64: 4, 16, 1>}, {transform_indices = @transform_3, window_bounds = array<i64: 1, 4, 1>}]} {
    %c0 = arith.constant 0 : index
    %c0_0 = arith.constant 0 : index
    %c0_1 = arith.constant 0 : index
    %0 = vector.load %arg1[%c0, %c0_0, %c0_1] : memref<4x16x256xf32, #tpu.memory_space<vmem>>, vector<4x16x256xf32>
    %c0_2 = arith.constant 0 : index
    %c0_3 = arith.constant 0 : index
    %c0_4 = arith.constant 0 : index
    %1 = vector.load %arg2[%c0_2, %c0_3, %c0_4] : memref<4x16x256xf32, #tpu.memory_space<vmem>>, vector<4x16x256xf32>
    %2 = arith.subf %0, %1 : vector<4x16x256xf32>
    %3 = arith.mulf %2, %2 : vector<4x16x256xf32>
    %cst = arith.constant dense<0.000000e+00> : vector<4x16xf32>
    %4 = vector.multi_reduction <add>, %3, %cst [2] : vector<4x16x256xf32> to vector<4x16xf32>
    %c0_5 = arith.constant 0 : index
    %c0_6 = arith.constant 0 : index
    %c0_7 = arith.constant 0 : index
    %5 = vector.load %arg3[%c0_5, %c0_6, %c0_7] : memref<4x16x1xf32, #tpu.memory_space<vmem>>, vector<4x16x1xf32>
    %6 = vector.shape_cast %5 : vector<4x16x1xf32> to vector<4x16xf32>
    %7 = arith.mulf %6, %6 : vector<4x16xf32>
    %8 = arith.mulf %4, %7 : vector<4x16xf32>
    %cst_8 = arith.constant 0.001953125 : f32
    %9 = vector.broadcast %cst_8 : f32 to vector<4x16xf32>
    %10 = arith.mulf %8, %9 : vector<4x16xf32>
    %11 = tpu.iota {dimensions = array<i32: 1>} : vector<4x16xi32>
    %cst_9 = arith.constant 0.000000e+00 : f32
    %12 = vector.broadcast %cst_9 : f32 to vector<4x1xf32>
    %cst_10 = arith.constant dense<0xFF800000> : vector<4xf32>
    %13 = vector.multi_reduction <maximumf>, %10, %cst_10 [1] : vector<4x16xf32> to vector<4xf32>
    %14 = vector.shape_cast %13 : vector<4xf32> to vector<4x1xf32>
    %15 = arith.addf %12, %14 : vector<4x1xf32>
    %16 = vector.broadcast %14 : vector<4x1xf32> to vector<4x16xf32>
    %17 = arith.cmpf oeq, %10, %16 : vector<4x16xf32>
    %c16_i32 = arith.constant 16 : i32
    %18 = vector.broadcast %c16_i32 : i32 to vector<4x16xi32>
    %19 = arith.select %17, %11, %18 : vector<4x16xi1>, vector<4x16xi32>
    %cst_11 = arith.constant dense<2147483647> : vector<4xi32>
    %20 = vector.multi_reduction <minsi>, %19, %cst_11 [1] : vector<4x16xi32> to vector<4xi32>
    %21 = vector.shape_cast %20 : vector<4xi32> to vector<4x1xi32>
    %22 = vector.broadcast %21 : vector<4x1xi32> to vector<4x16xi32>
    %23 = arith.cmpi eq, %11, %22 : vector<4x16xi32>
    %cst_12 = arith.constant 0xFF800000 : f32
    %24 = vector.broadcast %cst_12 : f32 to vector<4x16xf32>
    %25 = arith.select %23, %24, %10 : vector<4x16xi1>, vector<4x16xf32>
    %cst_13 = arith.constant dense<0xFF800000> : vector<4xf32>
    %26 = vector.multi_reduction <maximumf>, %25, %cst_13 [1] : vector<4x16xf32> to vector<4xf32>
    %27 = vector.shape_cast %26 : vector<4xf32> to vector<4x1xf32>
    %28 = arith.addf %15, %27 : vector<4x1xf32>
    %29 = vector.broadcast %27 : vector<4x1xf32> to vector<4x16xf32>
    %30 = arith.cmpf oeq, %25, %29 : vector<4x16xf32>
    %c16_i32_14 = arith.constant 16 : i32
    %31 = vector.broadcast %c16_i32_14 : i32 to vector<4x16xi32>
    %32 = arith.select %30, %11, %31 : vector<4x16xi1>, vector<4x16xi32>
    %cst_15 = arith.constant dense<2147483647> : vector<4xi32>
    %33 = vector.multi_reduction <minsi>, %32, %cst_15 [1] : vector<4x16xi32> to vector<4xi32>
    %34 = vector.shape_cast %33 : vector<4xi32> to vector<4x1xi32>
    %35 = vector.broadcast %34 : vector<4x1xi32> to vector<4x16xi32>
    %36 = arith.cmpi eq, %11, %35 : vector<4x16xi32>
    %cst_16 = arith.constant 0xFF800000 : f32
    %37 = vector.broadcast %cst_16 : f32 to vector<4x16xf32>
    %38 = arith.select %36, %37, %25 : vector<4x16xi1>, vector<4x16xf32>
    %cst_17 = arith.constant dense<0xFF800000> : vector<4xf32>
    %39 = vector.multi_reduction <maximumf>, %38, %cst_17 [1] : vector<4x16xf32> to vector<4xf32>
    %40 = vector.shape_cast %39 : vector<4xf32> to vector<4x1xf32>
    %41 = arith.addf %28, %40 : vector<4x1xf32>
    %42 = vector.broadcast %40 : vector<4x1xf32> to vector<4x16xf32>
    %43 = arith.cmpf oeq, %38, %42 : vector<4x16xf32>
    %c16_i32_18 = arith.constant 16 : i32
    %44 = vector.broadcast %c16_i32_18 : i32 to vector<4x16xi32>
    %45 = arith.select %43, %11, %44 : vector<4x16xi1>, vector<4x16xi32>
    %cst_19 = arith.constant dense<2147483647> : vector<4xi32>
    %46 = vector.multi_reduction <minsi>, %45, %cst_19 [1] : vector<4x16xi32> to vector<4xi32>
    %47 = vector.shape_cast %46 : vector<4xi32> to vector<4x1xi32>
    %48 = vector.broadcast %47 : vector<4x1xi32> to vector<4x16xi32>
    %49 = arith.cmpi eq, %11, %48 : vector<4x16xi32>
    %cst_20 = arith.constant 0xFF800000 : f32
    %50 = vector.broadcast %cst_20 : f32 to vector<4x16xf32>
    %51 = arith.select %49, %50, %38 : vector<4x16xi1>, vector<4x16xf32>
    %cst_21 = arith.constant dense<0xFF800000> : vector<4xf32>
    %52 = vector.multi_reduction <maximumf>, %51, %cst_21 [1] : vector<4x16xf32> to vector<4xf32>
    %53 = vector.shape_cast %52 : vector<4xf32> to vector<4x1xf32>
    %54 = arith.addf %41, %53 : vector<4x1xf32>
    %55 = vector.broadcast %53 : vector<4x1xf32> to vector<4x16xf32>
    %56 = arith.cmpf oeq, %51, %55 : vector<4x16xf32>
    %c16_i32_22 = arith.constant 16 : i32
    %57 = vector.broadcast %c16_i32_22 : i32 to vector<4x16xi32>
    %58 = arith.select %56, %11, %57 : vector<4x16xi1>, vector<4x16xi32>
    %cst_23 = arith.constant dense<2147483647> : vector<4xi32>
    %59 = vector.multi_reduction <minsi>, %58, %cst_23 [1] : vector<4x16xi32> to vector<4xi32>
    %60 = vector.shape_cast %59 : vector<4xi32> to vector<4x1xi32>
    %61 = vector.broadcast %60 : vector<4x1xi32> to vector<4x16xi32>
    %62 = arith.cmpi eq, %11, %61 : vector<4x16xi32>
    %cst_24 = arith.constant 0xFF800000 : f32
    %63 = vector.broadcast %cst_24 : f32 to vector<4x16xf32>
    %64 = arith.select %62, %63, %51 : vector<4x16xi1>, vector<4x16xf32>
    %cst_25 = arith.constant dense<0xFF800000> : vector<4xf32>
    %65 = vector.multi_reduction <maximumf>, %64, %cst_25 [1] : vector<4x16xf32> to vector<4xf32>
    %66 = vector.shape_cast %65 : vector<4xf32> to vector<4x1xf32>
    %67 = arith.addf %54, %66 : vector<4x1xf32>
    %68 = vector.broadcast %66 : vector<4x1xf32> to vector<4x16xf32>
    %69 = arith.cmpf oeq, %64, %68 : vector<4x16xf32>
    %c16_i32_26 = arith.constant 16 : i32
    %70 = vector.broadcast %c16_i32_26 : i32 to vector<4x16xi32>
    %71 = arith.select %69, %11, %70 : vector<4x16xi1>, vector<4x16xi32>
    %cst_27 = arith.constant dense<2147483647> : vector<4xi32>
    %72 = vector.multi_reduction <minsi>, %71, %cst_27 [1] : vector<4x16xi32> to vector<4xi32>
    %73 = vector.shape_cast %72 : vector<4xi32> to vector<4x1xi32>
    %74 = vector.broadcast %73 : vector<4x1xi32> to vector<4x16xi32>
    %75 = arith.cmpi eq, %11, %74 : vector<4x16xi32>
    %cst_28 = arith.constant 0xFF800000 : f32
    %76 = vector.broadcast %cst_28 : f32 to vector<4x16xf32>
    %77 = arith.select %75, %76, %64 : vector<4x16xi1>, vector<4x16xf32>
    %cst_29 = arith.constant dense<0xFF800000> : vector<4xf32>
    %78 = vector.multi_reduction <maximumf>, %77, %cst_29 [1] : vector<4x16xf32> to vector<4xf32>
    %79 = vector.shape_cast %78 : vector<4xf32> to vector<4x1xf32>
    %80 = arith.addf %67, %79 : vector<4x1xf32>
    %81 = vector.broadcast %79 : vector<4x1xf32> to vector<4x16xf32>
    %82 = arith.cmpf oeq, %77, %81 : vector<4x16xf32>
    %c16_i32_30 = arith.constant 16 : i32
    %83 = vector.broadcast %c16_i32_30 : i32 to vector<4x16xi32>
    %84 = arith.select %82, %11, %83 : vector<4x16xi1>, vector<4x16xi32>
    %cst_31 = arith.constant dense<2147483647> : vector<4xi32>
    %85 = vector.multi_reduction <minsi>, %84, %cst_31 [1] : vector<4x16xi32> to vector<4xi32>
    %86 = vector.shape_cast %85 : vector<4xi32> to vector<4x1xi32>
    %87 = vector.broadcast %86 : vector<4x1xi32> to vector<4x16xi32>
    %88 = arith.cmpi eq, %11, %87 : vector<4x16xi32>
    %cst_32 = arith.constant 0xFF800000 : f32
    %89 = vector.broadcast %cst_32 : f32 to vector<4x16xf32>
    %90 = arith.select %88, %89, %77 : vector<4x16xi1>, vector<4x16xf32>
    %cst_33 = arith.constant dense<0xFF800000> : vector<4xf32>
    %91 = vector.multi_reduction <maximumf>, %90, %cst_33 [1] : vector<4x16xf32> to vector<4xf32>
    %92 = vector.shape_cast %91 : vector<4xf32> to vector<4x1xf32>
    %93 = arith.addf %80, %92 : vector<4x1xf32>
    %94 = vector.broadcast %92 : vector<4x1xf32> to vector<4x16xf32>
    %95 = arith.cmpf oeq, %90, %94 : vector<4x16xf32>
    %c16_i32_34 = arith.constant 16 : i32
    %96 = vector.broadcast %c16_i32_34 : i32 to vector<4x16xi32>
    %97 = arith.select %95, %11, %96 : vector<4x16xi1>, vector<4x16xi32>
    %cst_35 = arith.constant dense<2147483647> : vector<4xi32>
    %98 = vector.multi_reduction <minsi>, %97, %cst_35 [1] : vector<4x16xi32> to vector<4xi32>
    %99 = vector.shape_cast %98 : vector<4xi32> to vector<4x1xi32>
    %100 = vector.broadcast %99 : vector<4x1xi32> to vector<4x16xi32>
    %101 = arith.cmpi eq, %11, %100 : vector<4x16xi32>
    %cst_36 = arith.constant 0xFF800000 : f32
    %102 = vector.broadcast %cst_36 : f32 to vector<4x16xf32>
    %103 = arith.select %101, %102, %90 : vector<4x16xi1>, vector<4x16xf32>
    %cst_37 = arith.constant dense<0xFF800000> : vector<4xf32>
    %104 = vector.multi_reduction <maximumf>, %103, %cst_37 [1] : vector<4x16xf32> to vector<4xf32>
    %105 = vector.shape_cast %104 : vector<4xf32> to vector<4x1xf32>
    %106 = arith.addf %93, %105 : vector<4x1xf32>
    %cst_38 = arith.constant 1.250000e-01 : f32
    %107 = vector.broadcast %cst_38 : f32 to vector<4x1xf32>
    %108 = arith.mulf %106, %107 : vector<4x1xf32>
    %c0_39 = arith.constant 0 : index
    %c0_40 = arith.constant 0 : index
    %c0_41 = arith.constant 0 : index
    %109 = vector.load %arg4[%c0_39, %c0_40, %c0_41] : memref<1x4x1xf32, #tpu.memory_space<vmem>>, vector<1x4x1xf32>
    %110 = vector.shape_cast %109 : vector<1x4x1xf32> to vector<4x1xf32>
    %111 = vector.shape_cast %108 : vector<4x1xf32> to vector<1x4x1xf32>
    tpu.vector_store %arg4[%c0_39, %c0_40, %c0_41], %111 {strides = array<i32>} : memref<1x4x1xf32, #tpu.memory_space<vmem>>, vector<1x4x1xf32>,
    return
  }
  func.func @transform_0(%arg0: i32) -> (i32, i32, i32) {
    %c0_i32 = arith.constant 0 : i32
    %c0_i32_0 = arith.constant 0 : i32
    %c0_i32_1 = arith.constant 0 : i32
    return %arg0, %c0_i32, %c0_i32_0 : i32, i32, i32
  }
  func.func @transform_1(%arg0: i32) -> (i32, i32, i32) {
    %c0_i32 = arith.constant 0 : i32
    %c0_i32_0 = arith.constant 0 : i32
    %c0_i32_1 = arith.constant 0 : i32
    return %arg0, %c0_i32, %c0_i32_0 : i32, i32, i32
  }
  func.func @transform_2(%arg0: i32) -> (i32, i32, i32) {
    %c0_i32 = arith.constant 0 : i32
    %c0_i32_0 = arith.constant 0 : i32
    %c0_i32_1 = arith.constant 0 : i32
    return %arg0, %c0_i32, %c0_i32_0 : i32, i32, i32
  }
  func.func @transform_3(%arg0: i32) -> (i32, i32, i32) {
    %c0_i32 = arith.constant 0 : i32
    %c0_i32_0 = arith.constant 0 : i32
    %c0_i32_1 = arith.constant 0 : i32
    return %arg0, %c0_i32, %c0_i32_0 : i32, i32, i32
  }
}

</mosaic_0001>

<bundles_post_ra>
// kernel: tpu_custom_call.1
= control target key start
LH: loop header
LB: loop body
LE: loop exit
PB: predicated region body
PF: predicated region fallthrough
CT: control target
= control target key end

     0   :  { %8 = vsyncpa [#allocation3], 0  ;;  %s753_s0 = inlined_call_operand.hbm [shape: f32[4,16,256], index: 0, kind: input, shape index: {}]   ;;  %s754_s1 = inlined_call_operand.hbm [shape: f32[4,16,256], index: 1, kind: input, shape index: {}]   ;;  %s755_s2 = inlined_call_operand.vmem [shape: f32[4,16,1], index: 2, kind: input, shape index: {}]   ;;  %s756_s3 = inlined_call_operand.vmem [shape: f32[1,4,1], index: 3, kind: output, shape index: {}]  }
   0x1   :  { %9 = vsyncpa [#allocation5], 0  ;;  %s572_s12 = smov [#allocation2]  }
   0x2   :  { %s15_s13 = sshll.u32 %s572_s12, 4  ;;  %s16_s13 = int_to_ptr.vmem [resolvable:$true] %s15_s13 }
   0x3   :  { %s536_s14 = scalar_lea.vmem %s16_s13, 2048  ;;  %p541_p1 = scmp.lt.s32.totalorder %s16_s13, %s16_s13 }
   0x4   :  { %p537_p0 = scmp.ne.s32.totalorder %s16_s13, %s536_s14  ;;  %p542_p2 = scmp.lt.s32.totalorder %s536_s14, %s536_s14 }
   0x6   :  { %p543_p3 = por %p542_p2, %p541_p1 }
   0x8   :  { %p544_p4 = pnand %p543_p3, %p537_p0 }
   0xa   :  { %547 = shalt.err (!%p544_p4)
}
   0xb   :  { %s573_s15 = smov 256   ;;  %s574_s16 = smov 16  }
   0xc   :  { %21 = dma.hbm_to_vmem [thread:$0]  %s753_s0, 2048, %s16_s13, [#allocation3], %s573_s15, %s573_s15, %s574_s16  }
   0xd   :  { %s575_s19 = smov [#allocation4]  }
   0xe   :  { %s27_s20 = sshll.u32 %s575_s19, 4  ;;  %s28_s20 = int_to_ptr.vmem [resolvable:$true] %s27_s20 }
   0xf   :  { %s556_s21 = scalar_lea.vmem %s28_s20, 2048  ;;  %p561_p6 = scmp.lt.s32.totalorder %s28_s20, %s28_s20 }
  0x10   :  { %p557_p5 = scmp.ne.s32.totalorder %s28_s20, %s556_s21  ;;  %p562_p7 = scmp.lt.s32.totalorder %s556_s21, %s556_s21 }
  0x12   :  { %p563_p8 = por %p562_p7, %p561_p6 }
  0x14   :  { %p564_p9 = pnand %p563_p8, %p557_p5 }
  0x16   :  { %567 = shalt.err (!%p564_p9)
}
  0x17   :  { %33 = dma.hbm_to_vmem [thread:$0]  %s754_s1, 2048, %s28_s20, [#allocation5], %s573_s15, %s573_s15, %s574_s16  }
  0x18   :  { %568 = dma.done.wait [#allocation3], 2048  }
  0x19   :  { %569 = vsyncadd [#allocation3], 4294965248 }
  0x1a   :  { %570 = dma.done.wait [#allocation5], 2048  }
  0x1b   :  { %571 = vsyncadd [#allocation5], 4294965248  ;;  %v42_v0 = vld [vmem:[#allocation2] sm:$0xff]  ;;  %v43_v1 = vld [vmem:[#allocation2 + $0x8] sm:$0xff]  ;;  %vm205_vm0 = vcmask 130112   ;;  %vm234_vm1 = vcmask 1041409  }
  0x1c   :  { %v58_v2 = vld [vmem:[#allocation4] sm:$0xff]  ;;  %v59_v3 = vld [vmem:[#allocation4 + $0x8] sm:$0xff]  ;;  %v44_v5 = vld [vmem:[#allocation2 + $0x10] sm:$0xff]  ;;  %vm236_vm2 = vcmask 1042434   ;;  %vm238_vm3 = vcmask 1043459   ;;  %vm241_vm4 = vcmask 125952  }
  0x1d   :  { %v74_v4 = vsub.f32 %v42_v0, %v58_v2  ;;  %v45_v6 = vld [vmem:[#allocation2 + $0x18] sm:$0xff]  ;;  %v75_v7 = vsub.f32 %v43_v1, %v59_v3  ;;  %v60_v8 = vld [vmem:[#allocation4 + $0x10] sm:$0xff]  ;;  %v46_v10 = vld [vmem:[#allocation2 + $0x20] sm:$0xff] }
  0x1e   :  { %v61_v9 = vld [vmem:[#allocation4 + $0x18] sm:$0xff]  ;;  %v76_v12 = vsub.f32 %v44_v5, %v60_v8  ;;  %v47_v14 = vld [vmem:[#allocation2 + $0x28] sm:$0xff]  ;;  %v62_v15 = vld [vmem:[#allocation4 + $0x20] sm:$0xff]  ;;  %v576_v8 = vmov 0  }
  0x1f   :  { %v90_v11 = vmul.f32 %v74_v4, %v74_v4  ;;  %v77_v13 = vsub.f32 %v45_v6, %v61_v9  ;;  %v63_v16 = vld [vmem:[#allocation4 + $0x28] sm:$0xff]  ;;  %v91_v17 = vmul.f32 %v75_v7, %v75_v7  ;;  %v78_v18 = vsub.f32 %v46_v10, %v62_v15  ;;  %v48_v20 = vld [vmem:[#allocation2 + $0x30] sm:$0xff]  ;;  %v49_v21 = vld [vmem:[#allocation2 + $0x38] sm:$0xff]  ;;  %526 = vset.pattern.permute.xlu0 %v576_v8 }
  0x20   :  { %v79_v19 = vsub.f32 %v47_v14, %v63_v16  ;;  %v64_v22 = vld [vmem:[#allocation4 + $0x30] sm:$0xff]  ;;  %v92_v23 = vmul.f32 %v76_v12, %v76_v12  ;;  %v65_v25 = vld [vmem:[#allocation4 + $0x38] sm:$0xff]  ;;  %v50_v27 = vld [vmem:[#allocation2 + $0x40] sm:$0xff]  ;;  %527 = vset.pattern.permute.xlu1 %v576_v8 }
  0x21   :  { %v93_v24 = vmul.f32 %v77_v13, %v77_v13  ;;  %v80_v26 = vsub.f32 %v48_v20, %v64_v22  ;;  %v51_v28 = vld [vmem:[#allocation2 + $0x48] sm:$0xff]  ;;  %v106_v29 = vadd.f32 %v91_v17, %v90_v11  ;;  %v94_v30 = vmul.f32 %v78_v18, %v78_v18  ;;  %v66_v33 = vld [vmem:[#allocation4 + $0x40] sm:$0xff]  ;;  %v52_v35 = vld [vmem:[#allocation2 + $0x50] sm:$0xff] }
  0x22   :  { %v95_v31 = vmul.f32 %v79_v19, %v79_v19  ;;  %v81_v32 = vsub.f32 %v49_v21, %v65_v25  ;;  %v67_v34 = vld [vmem:[#allocation4 + $0x48] sm:$0xff]  ;;  %v82_v38 = vsub.f32 %v50_v27, %v66_v33  ;;  %v53_v40 = vld [vmem:[#allocation2 + $0x58] sm:$0xff]  ;;  %v68_v41 = vld [vmem:[#allocation4 + $0x50] sm:$0xff]  ;;  %v162_v20 = vlaneseq }
  0x23   :  { %v109_v36 = vadd.f32 %v93_v24, %v92_v23  ;;  %v96_v37 = vmul.f32 %v80_v26, %v80_v26  ;;  %v83_v39 = vsub.f32 %v51_v28, %v67_v34  ;;  %v69_v42 = vld [vmem:[#allocation4 + $0x58] sm:$0xff]  ;;  %107 = vadd.xlane.f32.xlu0 %v106_v29  ;;  %v84_v45 = vsub.f32 %v52_v35, %v68_v41  ;;  %v54_v47 = vld [vmem:[#allocation2 + $0x60] sm:$0xff]  ;;  %v55_v48 = vld [vmem:[#allocation2 + $0x68] sm:$0xff] }
  0x24   :  { %v112_v43 = vadd.f32 %v95_v31, %v94_v30  ;;  %v97_v44 = vmul.f32 %v81_v32, %v81_v32  ;;  %v85_v46 = vsub.f32 %v53_v40, %v69_v42  ;;  %v70_v49 = vld [vmem:[#allocation4 + $0x60] sm:$0xff]  ;;  %v98_v50 = vmul.f32 %v82_v38, %v82_v38  ;;  %v71_v52 = vld [vmem:[#allocation4 + $0x68] sm:$0xff]  ;;  %v56_v54 = vld [vmem:[#allocation2 + $0x70] sm:$0xff] }
  0x25   :  { %v99_v51 = vmul.f32 %v83_v39, %v83_v39  ;;  %v86_v53 = vsub.f32 %v54_v47, %v70_v49  ;;  %v57_v55 = vld [vmem:[#allocation2 + $0x78] sm:$0xff]  ;;  %v100_v57 = vmul.f32 %v84_v45, %v84_v45  ;;  %v87_v59 = vsub.f32 %v55_v48, %v71_v52  ;;  %v72_v60 = vld [vmem:[#allocation4 + $0x70] sm:$0xff]  ;;  %v130_v9 = vld [vmem:[%s755_s2] sm:$0xff] }
  0x26   :  { %113 = vadd.xlane.f32.xlu1 %v112_v43  ;;  %v115_v56 = vadd.f32 %v97_v44, %v96_v37  ;;  %v101_v58 = vmul.f32 %v85_v46, %v85_v46  ;;  %v73_v61 = vld [vmem:[#allocation4 + $0x78] sm:$0xff]  ;;  %v88_v62 = vsub.f32 %v56_v54, %v72_v60  ;;  %v138_v10 = vmul.f32 %v130_v9, %v130_v9  ;;  %v131_v11 = vld [vmem:[%s755_s2 + $0x8] sm:$0xff]  ;;  %v132_v12 = vld [vmem:[%s755_s2 + $0x10] sm:$0xff] }
  0x27   :  { %v89_v63 = vsub.f32 %v57_v55, %v73_v61  ;;  %110 = vadd.xlane.f32.xlu0 %v109_v36  ;;  %v118_v0 = vadd.f32 %v99_v51, %v98_v50  ;;  %v102_v1 = vmul.f32 %v86_v53, %v86_v53  ;;  %v103_v2 = vmul.f32 %v87_v59, %v87_v59  ;;  %v133_v18 = vld [vmem:[%s755_s2 + $0x18] sm:$0xff]  ;;  %v134_v26 = vld [vmem:[%s755_s2 + $0x20] sm:$0xff]  ;;  %v135_v33 = vld [vmem:[%s755_s2 + $0x28] sm:$0xff] }
  0x28   :  { %v121_v3 = vadd.f32 %v101_v58, %v100_v57  ;;  %v104_v4 = vmul.f32 %v88_v62, %v88_v62  ;;  %v139_v15 = vmul.f32 %v131_v11, %v131_v11  ;;  %v140_v16 = vmul.f32 %v132_v12, %v132_v12  ;;  %v136_v38 = vld [vmem:[%s755_s2 + $0x30] sm:$0xff]  ;;  %v137_v43 = vld [vmem:[%s755_s2 + $0x38] sm:$0xff] }
  0x29   :  { %v105_v5 = vmul.f32 %v89_v63, %v89_v63  ;;  %v124_v6 = vadd.f32 %v103_v2, %v102_v1  ;;  %v141_v24 = vmul.f32 %v133_v18, %v133_v18  ;;  %v623_v28 = vand.u32 127, %v162_v20 }
  0x2a   :  { %116 = vadd.xlane.f32.xlu1 %v115_v56  ;;  %v142_v31 = vmul.f32 %v134_v26, %v134_v26  ;;  %v143_v36 = vmul.f32 %v135_v33, %v135_v33  ;;  %v144_v41 = vmul.f32 %v136_v38, %v136_v38  ;;  %v145_v46 = vmul.f32 %v137_v43, %v137_v43 }
  0x2b   :  { %119 = vadd.xlane.f32.xlu0 %v118_v0  ;;  %v127_v7 = vadd.f32 %v105_v5, %v104_v4  ;;  %v200_v55 = vadd.s32 4294967288, %v623_v28  ;;  %v197_v56 = vshrl.u32 %v162_v20, 7 }
  0x2d   :  { %v653_v58 = vsub.s32 %v200_v55, %v197_v56  ;;  %v656_v59 = vsub.s32 %v623_v28, %v197_v56 }
  0x2e   :  { %122 = vadd.xlane.f32.xlu1 %v121_v3 }
  0x2f   :  { %125 = vadd.xlane.f32.xlu0 %v124_v6 }
  0x32   :  { %128 = vadd.xlane.f32.xlu1 %v127_v7 }
  0xac   :  { %v108_v13 = vpop.xlane.xlu0 %107 }
  0xad   :  { %v146_v14 = vmul.f32 %v138_v10, %v108_v13 }
  0xaf   :  { %v114_v17 = vpop.xlane.xlu1 %113  ;;  %v615_v19 = vmul.f32 0.001953125, %v146_v14 }
  0xb0   :  { %v111_v21 = vpop.xlane.xlu0 %110  ;;  %v148_v23 = vmul.f32 %v140_v16, %v114_v17  ;;  %v249_v16 = vsub.s32 0, %v197_v56  ;;  %v261_v17 = vsub.s32 3, %v197_v56 }
  0xb1   :  { %v147_v22 = vmul.f32 %v139_v15, %v111_v21  ;;  %173 = vperm.xlu0 %526, %v615_v19  }
  0xb2   :  { %v625_v29 = vmul.f32 0.001953125, %v148_v23  ;;  %v253_v23 = vsub.s32 1, %v197_v56 }
  0xb3   :  { %v117_v25 = vpop.xlane.xlu1 %116  ;;  %v621_v27 = vmul.f32 0.001953125, %v147_v22 }
  0xb4   :  { %v149_v30 = vmul.f32 %v141_v24, %v117_v25  ;;  %v120_v32 = vpop.xlane.xlu0 %119 }
  0xb5   :  { %176 = vperm.xlu1 %527, %v621_v27   ;;  %276 = vbcast.lane.b32.xlu0 %v623_v28, 256  ;;  %v150_v35 = vmul.f32 %v142_v31, %v120_v32  ;;  %v257_v31 = vsub.s32 2, %v197_v56 }
  0xb6   :  { %v632_v34 = vmul.f32 0.001953125, %v149_v30 }
  0xb7   :  { %v123_v37 = vpop.xlane.xlu1 %122  ;;  %v639_v39 = vmul.f32 0.001953125, %v150_v35 }
  0xb8   :  { %v151_v40 = vmul.f32 %v143_v36, %v123_v37  ;;  %v126_v42 = vpop.xlane.xlu0 %125 }
  0xb9   :  { %179 = vperm.xlu1 %527, %v625_v29   ;;  %280 = vbcast.lane.b32.xlu0 %v623_v28, 264  ;;  %v152_v45 = vmul.f32 %v144_v41, %v126_v42 }
  0xba   :  { %v645_v44 = vmul.f32 0.001953125, %v151_v40 }
  0xbb   :  { %v129_v47 = vpop.xlane.xlu1 %128  ;;  %v648_v48 = vmul.f32 0.001953125, %v152_v45 }
  0xbc   :  { %v153_v49 = vmul.f32 %v145_v46, %v129_v47 }
  0xbd   :  { %182 = vperm.xlu1 %527, %v632_v34  }
  0xbe   :  { %v161_v50 = vmul.f32 0.001953125, %v153_v49 }
  0xc1   :  { %185 = vperm.xlu1 %527, %v639_v39  }
  0xc5   :  { %188 = vperm.xlu1 %527, %v645_v44  }
  0xc9   :  { %191 = vperm.xlu1 %527, %v648_v48  }
  0xcd   :  { %194 = vperm.xlu1 %527, %v161_v50  }
 0x12c   :  { %v174_v61 = vpop.permute.xlu0 %173 }
 0x12d   :  { %v199_v3 = vrot.slane %v174_v61, %v656_v59 }
 0x130   :  { %v177_v51 = vpop.permute.xlu1 %176  ;;  %v277_v15 = vpop.permute.xlu0 %276 }
 0x131   :  { %v204_v0 = vrot.slane %v177_v51, %v653_v58 }
 0x133   :  { %v206_v7 = vsel %vm205_vm0, %v204_v0, %v199_v3 }
 0x134   :  { %v180_v52 = vpop.permute.xlu1 %179  ;;  %v281_v20 = vpop.permute.xlu0 %280 }
 0x135   :  { %v210_v1 = vrot.slane %v180_v52, %v656_v59 }
 0x138   :  { %v183_v53 = vpop.permute.xlu1 %182 }
 0x139   :  { %v214_v60 = vrot.slane %v183_v53, %v653_v58 }
 0x13b   :  { %v215_v4 = vsel %vm205_vm0, %v214_v60, %v210_v1 }
 0x13c   :  { %v186_v54 = vpop.permute.xlu1 %185  ;;  %v235_v10 = vsel %vm234_vm1, %v215_v4, %v206_v7 }
 0x13d   :  { %v219_v2 = vrot.slane %v186_v54, %v656_v59 }
 0x140   :  { %v189_v57 = vpop.permute.xlu1 %188 }
 0x141   :  { %v223_v62 = vrot.slane %v189_v57, %v653_v58 }
 0x143   :  { %v224_v5 = vsel %vm205_vm0, %v223_v62, %v219_v2 }
 0x144   :  { %v192_v63 = vpop.permute.xlu1 %191  ;;  %v237_v12 = vsel %vm236_vm2, %v224_v5, %v235_v10 }
 0x145   :  { %v228_v8 = vrot.slane %v192_v63, %v656_v59 }
 0x148   :  { %v195_v6 = vpop.permute.xlu1 %194 }
 0x149   :  { %v232_v9 = vrot.slane %v195_v6, %v653_v58 }
 0x14b   :  { %v233_v11 = vsel %vm205_vm0, %v232_v9, %v228_v8 }
 0x14c   :  { %v673_v13 = vsel %vm238_vm3, %v233_v11, %v237_v12 }
 0x14d   :  { %v242_v14 = vsel %vm241_vm4, %v673_v13, -inf }
 0x14e   :  { %243 = vmax.xlane.f32.xlu1 %v242_v14 }
 0x1d7   :  { %v677_v18 = vpop.xlane.xlu1 %243 }
 0x1d8   :  { %v250_v21 = vrot.slane %v677_v18, %v249_v16  ;;  %v262_v22 = vrot.slane %v677_v18, %v261_v17  ;;  %v254_v26 = vrot.slane %v677_v18, %v253_v23 }
 0x1da   :  { %vm267_vm5 = vcmp.eq.f32.partialorder %v615_v19, %v250_v21  ;;  %vm274_vm6 = vcmp.eq.f32.partialorder %v161_v50, %v262_v22  ;;  %vm268_vm7 = vcmp.eq.f32.partialorder %v621_v27, %v250_v21  ;;  %vm269_vm8 = vcmp.eq.f32.partialorder %v625_v29, %v254_v26 }
 0x1db   :  { %v282_v24 = vsel %vm267_vm5, %v277_v15, 16  ;;  %v289_v25 = vsel %vm274_vm6, %v281_v20, 16  ;;  %v283_v30 = vsel %vm268_vm7, %v281_v20, 16  ;;  %v284_v32 = vsel %vm269_vm8, %v277_v15, 16 }
 0x1dc   :  { %291 = vperm.xlu0 %526, %v282_v24   ;;  %312 = vperm.xlu1 %527, %v289_v25   ;;  %vm270_vm9 = vcmp.eq.f32.partialorder %v632_v34, %v254_v26  ;;  %v258_v19 = vrot.slane %v677_v18, %v257_v31  ;;  %vm273_vm12 = vcmp.eq.f32.partialorder %v648_v48, %v262_v22 }
 0x1dd   :  { %v285_v33 = vsel %vm270_vm9, %v281_v20, 16  ;;  %v288_v29 = vsel %vm273_vm12, %v277_v15, 16 }
 0x1de   :  { %vm271_vm10 = vcmp.eq.f32.partialorder %v639_v39, %v258_v19  ;;  %vm272_vm11 = vcmp.eq.f32.partialorder %v645_v44, %v258_v19 }
 0x1df   :  { %v286_v35 = vsel %vm271_vm10, %v277_v15, 16  ;;  %v287_v27 = vsel %vm272_vm11, %v281_v20, 16 }
 0x1e0   :  { %294 = vperm.xlu0 %526, %v283_v30  }
 0x1e4   :  { %297 = vperm.xlu0 %526, %v284_v32  }
 0x1e8   :  { %300 = vperm.xlu0 %526, %v285_v33  }
 0x1ec   :  { %303 = vperm.xlu0 %526, %v286_v35  }
 0x1f0   :  { %306 = vperm.xlu0 %526, %v287_v27  }
 0x1f4   :  { %309 = vperm.xlu0 %526, %v288_v29  }
 0x257   :  { %v292_v36 = vpop.permute.xlu0 %291  ;;  %v313_v45 = vpop.permute.xlu1 %312 }
 0x258   :  { %v317_v47 = vrot.slane %v292_v36, %v656_v59  ;;  %v348_v51 = vrot.slane %v313_v45, %v653_v58 }
 0x25b   :  { %v295_v37 = vpop.permute.xlu0 %294 }
 0x25c   :  { %v321_v39 = vrot.slane %v295_v37, %v653_v58 }
 0x25e   :  { %v322_v52 = vsel %vm205_vm0, %v321_v39, %v317_v47 }
 0x25f   :  { %v298_v38 = vpop.permute.xlu0 %297 }
 0x260   :  { %v326_v43 = vrot.slane %v298_v38, %v656_v59 }
 0x263   :  { %v301_v34 = vpop.permute.xlu0 %300 }
 0x264   :  { %v330_v41 = vrot.slane %v301_v34, %v653_v58 }
 0x266   :  { %v331_v48 = vsel %vm205_vm0, %v330_v41, %v326_v43 }
 0x267   :  { %v304_v40 = vpop.permute.xlu0 %303  ;;  %v350_v54 = vsel %vm234_vm1, %v331_v48, %v322_v52 }
 0x268   :  { %v335_v46 = vrot.slane %v304_v40, %v656_v59 }
 0x26b   :  { %v307_v42 = vpop.permute.xlu0 %306 }
 0x26c   :  { %v339_v44 = vrot.slane %v307_v42, %v653_v58 }
 0x26e   :  { %v340_v49 = vsel %vm205_vm0, %v339_v44, %v335_v46 }
 0x26f   :  { %v310_v50 = vpop.permute.xlu0 %309  ;;  %v351_v56 = vsel %vm236_vm2, %v340_v49, %v350_v54 }
 0x270   :  { %v344_v53 = vrot.slane %v310_v50, %v656_v59 }
 0x272   :  { %v349_v55 = vsel %vm205_vm0, %v348_v51, %v344_v53 }
 0x273   :  { %v352_v57 = vsel %vm238_vm3, %v349_v55, %v351_v56 }
 0x274   :  { %v353_v60 = vsel %vm241_vm4, %v352_v57, 2147483647 }
 0x275   :  { %v355_v61 = vshra.s32 %v353_v60, 16  ;;  %v354_v63 = vand.u32 65535, %v353_v60 }
 0x277   :  { %v357_v62 = vcvt.s32.f32 %v355_v61  ;;  %v356_v58 = vcvt.s32.f32 %v354_v63 }
 0x279   :  { %358 = vmin.xlane.f32.xlu0 %v357_v62 }
 0x302   :  { %v359_v0 = vpop.xlane.xlu0 %358 }
 0x303   :  { %vm360_vm13 = vcmp.eq.f32.partialorder %v357_v62, %v359_v0  ;;  %v365_v59 = vcvt.f32.s32 %v359_v0 }
 0x304   :  { %v361_v1 = vsel %vm360_vm13, %v356_v58, inf }
 0x305   :  { %362 = vmin.xlane.f32.xlu1 %v361_v1  ;;  %v366_v3 = vshll.u32 %v365_v59, 16 }
 0x38e   :  { %v363_v2 = vpop.xlane.xlu1 %362 }
 0x38f   :  { %v364_v4 = vcvt.f32.s32 %v363_v2 }
 0x391   :  { %v367_v5 = vadd.s32 %v366_v3, %v364_v4 }
 0x393   :  { %vm368_vm14 = vcmp.eq.s32.totalorder %v623_v28, %v367_v5 }
 0x394   :  { %v369_v6 = vsel %vm368_vm14, -inf, %v673_v13 }
 0x395   :  { %v370_v7 = vsel %vm241_vm4, %v369_v6, -inf }
 0x396   :  { %371 = vmax.xlane.f32.xlu0 %v370_v7 }
 0x41f   :  { %v709_v8 = vpop.xlane.xlu0 %371 }
 0x420   :  { %vm374_vm15 = vcmp.eq.f32.partialorder %v369_v6, %v709_v8 }
 0x421   :  { %v375_v9 = vsel %vm374_vm15, %v623_v28, 16 }
 0x422   :  { %v376_v10 = vsel %vm241_vm4, %v375_v9, 2147483647 }
 0x423   :  { %v378_v11 = vshra.s32 %v376_v10, 16  ;;  %v377_v14 = vand.u32 65535, %v376_v10 }
 0x425   :  { %v380_v12 = vcvt.s32.f32 %v378_v11  ;;  %v379_v16 = vcvt.s32.f32 %v377_v14 }
 0x427   :  { %381 = vmin.xlane.f32.xlu0 %v380_v12 }
 0x4b0   :  { %v382_v15 = vpop.xlane.xlu0 %381 }
 0x4b1   :  { %vm383_vm0 = vcmp.eq.f32.partialorder %v380_v12, %v382_v15  ;;  %v388_v13 = vcvt.f32.s32 %v382_v15 }
 0x4b2   :  { %v384_v17 = vsel %vm383_vm0, %v379_v16, inf }
 0x4b3   :  { %385 = vmin.xlane.f32.xlu0 %v384_v17  ;;  %v389_v21 = vshll.u32 %v388_v13, 16 }
 0x53c   :  { %v386_v20 = vpop.xlane.xlu0 %385 }
 0x53d   :  { %v387_v22 = vcvt.f32.s32 %v386_v20 }
 0x53f   :  { %v390_v23 = vadd.s32 %v389_v21, %v387_v22 }
 0x541   :  { %vm391_vm1 = vcmp.eq.s32.totalorder %v623_v28, %v390_v23 }
 0x542   :  { %v392_v24 = vsel %vm391_vm1, -inf, %v369_v6 }
 0x543   :  { %v393_v25 = vsel %vm241_vm4, %v392_v24, -inf }
 0x544   :  { %394 = vmax.xlane.f32.xlu0 %v393_v25 }
 0x5cd   :  { %v716_v26 = vpop.xlane.xlu0 %394 }
 0x5ce   :  { %vm397_vm2 = vcmp.eq.f32.partialorder %v392_v24, %v716_v26 }
 0x5cf   :  { %v398_v30 = vsel %vm397_vm2, %v623_v28, 16  ;;  %vm513_vm2 = vcmask 3072  }
 0x5d0   :  { %v399_v31 = vsel %vm241_vm4, %v398_v30, 2147483647 }
 0x5d1   :  { %v401_v32 = vshra.s32 %v399_v31, 16  ;;  %v400_v33 = vand.u32 65535, %v399_v31 }
 0x5d3   :  { %v403_v19 = vcvt.s32.f32 %v401_v32  ;;  %v402_v27 = vcvt.s32.f32 %v400_v33 }
 0x5d5   :  { %404 = vmin.xlane.f32.xlu0 %v403_v19 }
 0x65e   :  { %v405_v35 = vpop.xlane.xlu0 %404 }
 0x65f   :  { %vm406_vm3 = vcmp.eq.f32.partialorder %v403_v19, %v405_v35  ;;  %v411_v36 = vcvt.f32.s32 %v405_v35 }
 0x660   :  { %v407_v29 = vsel %vm406_vm3, %v402_v27, inf }
 0x661   :  { %408 = vmin.xlane.f32.xlu1 %v407_v29  ;;  %v412_v38 = vshll.u32 %v411_v36, 16 }
 0x6ea   :  { %v409_v37 = vpop.xlane.xlu1 %408 }
 0x6eb   :  { %v410_v34 = vcvt.f32.s32 %v409_v37 }
 0x6ed   :  { %v413_v40 = vadd.s32 %v412_v38, %v410_v34 }
 0x6ef   :  { %vm414_vm5 = vcmp.eq.s32.totalorder %v623_v28, %v413_v40 }
 0x6f0   :  { %v415_v41 = vsel %vm414_vm5, -inf, %v392_v24 }
 0x6f1   :  { %v416_v42 = vsel %vm241_vm4, %v415_v41, -inf }
 0x6f2   :  { %417 = vmax.xlane.f32.xlu0 %v416_v42 }
 0x77b   :  { %v723_v39 = vpop.xlane.xlu0 %417 }
 0x77c   :  { %vm420_vm6 = vcmp.eq.f32.partialorder %v415_v41, %v723_v39 }
 0x77d   :  { %v421_v43 = vsel %vm420_vm6, %v623_v28, 16 }
 0x77e   :  { %v422_v44 = vsel %vm241_vm4, %v421_v43, 2147483647 }
 0x77f   :  { %v424_v45 = vshra.s32 %v422_v44, 16  ;;  %v423_v47 = vand.u32 65535, %v422_v44 }
 0x781   :  { %v426_v46 = vcvt.s32.f32 %v424_v45  ;;  %v425_v49 = vcvt.s32.f32 %v423_v47  ;;  %v373_v47 = vadd.f32 %v709_v8, %v677_v18 }
 0x783   :  { %427 = vmin.xlane.f32.xlu1 %v426_v46 }
 0x80c   :  { %v428_v48 = vpop.xlane.xlu1 %427 }
 0x80d   :  { %vm429_vm7 = vcmp.eq.f32.partialorder %v426_v46, %v428_v48  ;;  %v434_v51 = vcvt.f32.s32 %v428_v48  ;;  %v396_v48 = vadd.f32 %v716_v26, %v373_v47 }
 0x80e   :  { %v430_v50 = vsel %vm429_vm7, %v425_v49, inf }
 0x80f   :  { %431 = vmin.xlane.f32.xlu0 %v430_v50  ;;  %v435_v53 = vshll.u32 %v434_v51, 16  ;;  %v419_v49 = vadd.f32 %v723_v39, %v396_v48 }
 0x898   :  { %v432_v52 = vpop.xlane.xlu0 %431 }
 0x899   :  { %v433_v54 = vcvt.f32.s32 %v432_v52 }
 0x89b   :  { %v436_v55 = vadd.s32 %v435_v53, %v433_v54 }
 0x89d   :  { %vm437_vm8 = vcmp.eq.s32.totalorder %v623_v28, %v436_v55 }
 0x89e   :  { %v438_v56 = vsel %vm437_vm8, -inf, %v415_v41 }
 0x89f   :  { %v439_v57 = vsel %vm241_vm4, %v438_v56, -inf }
 0x8a0   :  { %440 = vmax.xlane.f32.xlu1 %v439_v57 }
 0x929   :  { %v730_v60 = vpop.xlane.xlu1 %440 }
 0x92a   :  { %vm443_vm9 = vcmp.eq.f32.partialorder %v438_v56, %v730_v60  ;;  %v442_v50 = vadd.f32 %v730_v60, %v419_v49 }
 0x92b   :  { %v444_v61 = vsel %vm443_vm9, %v623_v28, 16 }
 0x92c   :  { %v445_v62 = vsel %vm241_vm4, %v444_v61, 2147483647 }
 0x92d   :  { %v447_v63 = vshra.s32 %v445_v62, 16  ;;  %v446_v58 = vand.u32 65535, %v445_v62 }
 0x92f   :  { %v449_v0 = vcvt.s32.f32 %v447_v63  ;;  %v448_v59 = vcvt.s32.f32 %v446_v58 }
 0x931   :  { %450 = vmin.xlane.f32.xlu0 %v449_v0 }
 0x9ba   :  { %v451_v1 = vpop.xlane.xlu0 %450 }
 0x9bb   :  { %vm452_vm10 = vcmp.eq.f32.partialorder %v449_v0, %v451_v1  ;;  %v457_v3 = vcvt.f32.s32 %v451_v1 }
 0x9bc   :  { %v453_v2 = vsel %vm452_vm10, %v448_v59, inf }
 0x9bd   :  { %454 = vmin.xlane.f32.xlu1 %v453_v2  ;;  %v458_v5 = vshll.u32 %v457_v3, 16 }
 0xa46   :  { %v455_v4 = vpop.xlane.xlu1 %454 }
 0xa47   :  { %v456_v6 = vcvt.f32.s32 %v455_v4 }
 0xa49   :  { %v459_v7 = vadd.s32 %v458_v5, %v456_v6 }
 0xa4b   :  { %vm460_vm11 = vcmp.eq.s32.totalorder %v623_v28, %v459_v7 }
 0xa4c   :  { %v461_v9 = vsel %vm460_vm11, -inf, %v438_v56 }
 0xa4d   :  { %v462_v10 = vsel %vm241_vm4, %v461_v9, -inf }
 0xa4e   :  { %463 = vmax.xlane.f32.xlu0 %v462_v10 }
 0xad7   :  { %v464_v11 = vpop.xlane.xlu0 %463 }
 0xad8   :  { %vm466_vm12 = vcmp.eq.f32.partialorder %v461_v9, %v464_v11  ;;  %v465_v51 = vadd.f32 %v464_v11, %v442_v50 }
 0xad9   :  { %v467_v12 = vsel %vm466_vm12, %v623_v28, 16 }
 0xada   :  { %v468_v14 = vsel %vm241_vm4, %v467_v12, 2147483647 }
 0xadb   :  { %v470_v15 = vshra.s32 %v468_v14, 16  ;;  %v469_v17 = vand.u32 65535, %v468_v14 }
 0xadd   :  { %v472_v16 = vcvt.s32.f32 %v470_v15  ;;  %v471_v20 = vcvt.s32.f32 %v469_v17 }
 0xadf   :  { %473 = vmin.xlane.f32.xlu1 %v472_v16 }
 0xb68   :  { %v474_v13 = vpop.xlane.xlu1 %473 }
 0xb69   :  { %vm475_vm13 = vcmp.eq.f32.partialorder %v472_v16, %v474_v13  ;;  %v480_v22 = vcvt.f32.s32 %v474_v13 }
 0xb6a   :  { %v476_v21 = vsel %vm475_vm13, %v471_v20, inf }
 0xb6b   :  { %477 = vmin.xlane.f32.xlu0 %v476_v21  ;;  %v481_v24 = vshll.u32 %v480_v22, 16 }
 0xbf4   :  { %v478_v23 = vpop.xlane.xlu0 %477 }
 0xbf5   :  { %v479_v25 = vcvt.f32.s32 %v478_v23 }
 0xbf7   :  { %v482_v30 = vadd.s32 %v481_v24, %v479_v25 }
 0xbf9   :  { %vm483_vm14 = vcmp.eq.s32.totalorder %v623_v28, %v482_v30 }
 0xbfa   :  { %v484_v31 = vsel %vm483_vm14, -inf, %v461_v9 }
 0xbfb   :  { %v485_v32 = vsel %vm241_vm4, %v484_v31, -inf }
 0xbfc   :  { %486 = vmax.xlane.f32.xlu1 %v485_v32 }
 0xc85   :  { %v487_v19 = vpop.xlane.xlu1 %486 }
 0xc86   :  { %vm489_vm15 = vcmp.eq.f32.partialorder %v484_v31, %v487_v19  ;;  %v488_v52 = vadd.f32 %v487_v19, %v465_v51 }
 0xc87   :  { %v490_v33 = vsel %vm489_vm15, %v623_v28, 16 }
 0xc88   :  { %v491_v35 = vsel %vm241_vm4, %v490_v33, 2147483647 }
 0xc89   :  { %v493_v27 = vshra.s32 %v491_v35, 16  ;;  %v492_v36 = vand.u32 65535, %v491_v35 }
 0xc8b   :  { %v495_v29 = vcvt.s32.f32 %v493_v27  ;;  %v494_v38 = vcvt.s32.f32 %v492_v36 }
 0xc8d   :  { %496 = vmin.xlane.f32.xlu0 %v495_v29 }
 0xd16   :  { %v497_v37 = vpop.xlane.xlu0 %496 }
 0xd17   :  { %vm498_vm0 = vcmp.eq.f32.partialorder %v495_v29, %v497_v37  ;;  %v503_v40 = vcvt.f32.s32 %v497_v37 }
 0xd18   :  { %v499_v34 = vsel %vm498_vm0, %v494_v38, inf }
 0xd19   :  { %500 = vmin.xlane.f32.xlu1 %v499_v34  ;;  %v504_v42 = vshll.u32 %v503_v40, 16 }
 0xda2   :  { %v501_v41 = vpop.xlane.xlu1 %500 }
 0xda3   :  { %v502_v43 = vcvt.f32.s32 %v501_v41 }
 0xda5   :  { %v505_v44 = vadd.s32 %v504_v42, %v502_v43 }
 0xda7   :  { %vm506_vm1 = vcmp.eq.s32.totalorder %v623_v28, %v505_v44 }
 0xda8   :  { %v507_v45 = vsel %vm506_vm1, -inf, %v484_v31 }
 0xda9   :  { %v508_v46 = vsel %vm241_vm4, %v507_v45, -inf }
 0xdaa   :  { %509 = vmax.xlane.f32.xlu0 %v508_v46 }
 0xe33   :  { %v510_v53 = vpop.xlane.xlu0 %509 }
 0xe34   :  { %v511_v54 = vadd.f32 %v510_v53, %v488_v52 }
 0xe36   :  { %v512_v55 = vmul.f32 0.125, %v511_v54 }
 0xe38   :  { %514 = vst.msk [vmem:[%s756_s3] sm:$0xf] %vm513_vm2, %v512_v55 }
 0xe39   :  { %519 = vsyncpa [#allocation3], 1 }
 0xe3a   :  { %520 = vsyncpa [#allocation5], 1 }

</bundles_post_ra>
